<compile_context>
chip_gen: v7x
topology: tpu7x:2x2x1
jax: 0.10.0
libtpu: 0.0.40
codegen_flags: <defaults>
</compile_context>

<pallas_src>
import jax
import jax.numpy as jnp
from jax.experimental import pallas as pl
from jax.experimental.pallas import tpu as pltpu


def _round_up(n, m):
    return ((n + m - 1) // m) * m


# --------------------------------------------------------------------------------------
# Fused TCN kernel: one (batch, time-tile) per grid step, entire forward pass in VMEM
# --------------------------------------------------------------------------------------
def _make_tcn_kernel(block_metas, lin_meta, out_p, t_tile, t_in, halo_pad):

    def causal_shift(x, s):
        """y[:, t] = x[:, t - s] for t >= s else 0 (within-window causal shift; the halo
        guarantees only discarded lanes ever depend on the zero fill)."""
        if s == 0:
            return x
        c, t = x.shape
        return jnp.concatenate([jnp.zeros((c, s), x.dtype), x[:, : t - s]], axis=1)

    def conv(w_ref, b_ref, x, meta):
        """One causal dilated conv (optionally with fused 1x1 downsample rows) as a single
        bf16 MXU contraction with f32 accumulation.  x: (Cin_p, T_in) float32."""
        r0, rows, cols = meta["row"], meta["rows"], meta["cols"]
        taps, dilation = meta["taps"], meta["dilation"]
        w = w_ref[r0:r0 + rows, :cols]                      # bf16 (rows, cols), static slice
        bias = b_ref[r0:r0 + rows, :]                       # f32  (rows, 1)
        if taps == 1:
            xc = x
        else:
            # im2col: row-block k holds x shifted right by (K-1-k)*dilation.
            xc = jnp.concatenate(
                [causal_shift(x, (taps - 1 - k) * dilation) for k in range(taps)],
                axis=0)                                     # (taps*Cin_p, T_in) f32
        acc = jnp.dot(w, xc.astype(jnp.bfloat16),
                      preferred_element_type=jnp.float32)   # bf16 MXU, f32 accumulate
        return acc + bias

    def kernel(x_hbm, w_ref, b_ref, o_ref, xbuf, dma_sem):
        b = pl.program_id(0)
        ti = pl.program_id(1)
        t0 = pl.multiple_of(ti * t_tile, 128)
        # Haloed (left-context) input window for this tile: HBM -> VMEM, bf16.
        cp = pltpu.make_async_copy(x_hbm.at[b, :, pl.ds(t0, t_in)], xbuf, dma_sem)
        cp.start()
        cp.wait()
        x = xbuf[...].astype(jnp.float32)                   # (C0_p, T_in), time on lanes

        for blk in block_metas:
            co = blk["cout_p"]
            acc = conv(w_ref, b_ref, x, blk["conv1"])       # conv1 (+ fused 1x1 downsample)
            h = jnp.maximum(acc[:co, :], 0.0)               # ReLU (dropout = identity)
            res = acc[co:2 * co, :] if blk["has_down"] else x
            h = jnp.maximum(conv(w_ref, b_ref, h, blk["conv2"])[:co, :], 0.0)
            x = jnp.maximum(h + res, 0.0)                   # residual add + final ReLU

        y = conv(w_ref, b_ref, x, lin_meta)                 # per-time-step Linear
        # Drop the recomputed halo lanes (128-aligned slice) -> lane-dense store.
        o_ref[0] = y[:out_p, halo_pad:].astype(o_ref.dtype)

    return kernel


def tcn_forward(kparams, x_nct, *, t_tile=512):
    """x_nct: (B, C_in, T) -> (B, outputs, T)   (same layout as the PyTorch module)."""
    B, cin, T = x_nct.shape
    c0_p, out_p, outputs = kparams["c0_pad"], kparams["out_pad"], kparams["outputs"]

    t_tile = max(128, min(_round_up(t_tile, 128), _round_up(T, 128)))
    t_pad = _round_up(T, t_tile)
    nt = t_pad // t_tile
    halo_pad = _round_up(max(kparams["halo"], 1), 128)      # lane-aligned left context
    t_in = t_tile + halo_pad

    # One pad (channels -> sublane multiple, causal left halo, right pad to a tile
    # multiple) and a downcast to bf16: halves input HBM traffic.
    x = jnp.pad(x_nct, ((0, 0), (0, c0_p - cin), (halo_pad, t_pad - T))).astype(jnp.bfloat16)

    wblob, bblob = kparams["wblob"], kparams["bblob"]
    kernel = _make_tcn_kernel(kparams["blocks"], kparams["linear"], out_p,
                              t_tile, t_in, halo_pad)

    # VMEM budget estimate (input window + resident blobs (2 pipeline bufs) + output tile
    # + activation / im2col working set) and a cost hint for the XLA scheduler.
    act_bytes = 8 * kparams["cmax_p"] * kparams["kernel_size"] * t_in * 4
    est_vmem = (c0_p * t_in * 2 + 2 * wblob.size * 2 + 2 * bblob.shape[0] * 128 * 4
                + 2 * out_p * t_tile * 4 + act_bytes)
    cost = pl.CostEstimate(
        flops=int(2 * B * nt * t_in * kparams["mac"]),
        transcendentals=0,
        bytes_accessed=int(B * nt * c0_p * t_in * 2 + B * out_p * t_pad * 4
                           + wblob.size * 2 + bblob.size * 4))

    y = pl.pallas_call(
        kernel,
        out_shape=jax.ShapeDtypeStruct((B, out_p, t_pad), jnp.float32),
        grid=(B, nt),
        in_specs=[
            pl.BlockSpec(memory_space=pl.ANY),                    # x stays in HBM
            pl.BlockSpec(wblob.shape, lambda b, t: (0, 0)),       # resident bf16 weight blob
            pl.BlockSpec(bblob.shape, lambda b, t: (0, 0)),       # resident f32 bias blob
        ],
        out_specs=pl.BlockSpec((1, out_p, t_tile), lambda b, t: (b, 0, t)),
        scratch_shapes=[
            pltpu.VMEM((c0_p, t_in), jnp.bfloat16),               # haloed input window
            pltpu.SemaphoreType.DMA,
        ],
        compiler_params=pltpu.CompilerParams(
            dimension_semantics=("parallel", "parallel"),
            vmem_limit_bytes=int(min(64 << 20, max(16 << 20, 2 * est_vmem)))),
        cost_estimate=cost,
    )(x, wblob, bblob)
    return y[:, :outputs, :T]


# --------------------------------------------------------------------------------------
# Parameters: deterministic init mirroring torch shapes, weight-norm folded at pack time
# --------------------------------------------------------------------------------------
def _fold_weight_norm(v_oik, g_o):
    """w = g * v / ||v||, norm over (in_channels, kernel) per out channel (torch dim=0)."""
    norm = jnp.sqrt(jnp.sum(v_oik * v_oik, axis=(1, 2), keepdims=True))
    return v_oik * (g_o.reshape(-1, 1, 1) / norm)


def _conv_params(key, cin, cout, K, *, weight_norm):
    kw, kb = jax.random.split(key)
    bound = 1.0 / (cin * K) ** 0.5
    v = jax.random.uniform(kw, (cout, cin, K), jnp.float32, -bound, bound)
    if weight_norm:
        g = jnp.sqrt(jnp.sum(v * v, axis=(1, 2)))      # torch weight_norm init: g = ||v||
        w = _fold_weight_norm(v, g)
    else:
        w = v
    b = jax.random.uniform(kb, (cout,), jnp.float32, -bound, bound)
    return w, b                                         # torch layout (C_out, C_in, K)


def init_tcn_params(key, in_channels, dilations, channels, kernel_size, outputs):
    blocks = []
    cin = in_channels
    for dilation, cout in zip(dilations, channels):
        key, k1, k2, k3 = jax.random.split(key, 4)
        w1, b1 = _conv_params(k1, cin, cout, kernel_size, weight_norm=True)
        w2, b2 = _conv_params(k2, cout, cout, kernel_size, weight_norm=True)
        if cin != cout:
            wd, bd = _conv_params(k3, cin, cout, 1, weight_norm=False)
        else:
            wd, bd = None, None
        blocks.append(dict(dilation=dilation, w1=w1, b1=b1, w2=w2, b2=b2, wd=wd, bd=bd))
        cin = cout
    key, kw, kb = jax.random.split(key, 3)
    bound = 1.0 / channels[-1] ** 0.5
    lw = jax.random.uniform(kw, (outputs, channels[-1]), jnp.float32, -bound, bound)
    lb = jax.random.uniform(kb, (outputs,), jnp.float32, -bound, bound)
    return dict(in_channels=in_channels, kernel_size=kernel_size, outputs=outputs,
                blocks=blocks, lin_w=lw, lin_b=lb)


def _pack_taps(w_oik, cout_p, cin_p):
    """torch (Cout, Cin, K) -> (cout_p, K*cin_p); column block k holds tap k."""
    cout, cin, K = w_oik.shape
    wp = jnp.zeros((cout_p, K, cin_p), jnp.float32)
    wp = wp.at[:cout, :, :cin].set(jnp.transpose(w_oik, (0, 2, 1)))
    return wp.reshape(cout_p, K * cin_p)


def _pad_vec(v, n):
    return jnp.zeros((n,), jnp.float32).at[:v.shape[0]].set(v)


def prepare_kernel_params(params):
    """Pad/pack all weights into one bf16 blob + one f32 bias column and build the
    per-layer metadata (static row offsets into the blob) used by the fused kernel."""
    K = params["kernel_size"]
    c0_p = _round_up(params["in_channels"], 8)

    entries_w, entries_b, entry_metas = [], [], []
    row_off = 0

    def add_entry(w2d, bvec, taps, dilation):
        nonlocal row_off
        rows_real, cols = w2d.shape
        rows_p = _round_up(rows_real, 16)       # 16-row blocks: bf16 packed-tile aligned
        wpad = jnp.zeros((rows_p, cols), jnp.float32).at[:rows_real, :].set(w2d)
        bpad = jnp.zeros((rows_p, 1), jnp.float32).at[:rows_real, 0].set(bvec)
        entries_w.append(wpad)
        entries_b.append(bpad)
        meta = dict(row=row_off, rows=rows_p, cols=cols, taps=taps, dilation=dilation)
        entry_metas.append(meta)
        row_off += rows_p
        return meta

    blocks_meta = []
    cin_p = c0_p
    for blk in params["blocks"]:
        d = blk["dilation"]
        cout = blk["b1"].shape[0]
        cout_p = _round_up(cout, 8)
        w1p = _pack_taps(blk["w1"], cout_p, cin_p)
        b1p = _pad_vec(blk["b1"], cout_p)
        has_down = blk["wd"] is not None
        if has_down:
            wd = blk["wd"][:, :, 0]                               # (cout, cin)
            wdp = jnp.zeros((cout_p, K, cin_p), jnp.float32)
            wdp = wdp.at[:cout, K - 1, :wd.shape[1]].set(wd)      # zero-shift tap column
            w_fused = jnp.concatenate([w1p, wdp.reshape(cout_p, K * cin_p)], axis=0)
            b_fused = jnp.concatenate([b1p, _pad_vec(blk["bd"], cout_p)])
        else:
            w_fused, b_fused = w1p, b1p
        m1 = add_entry(w_fused, b_fused, taps=K, dilation=d)
        m2 = add_entry(_pack_taps(blk["w2"], cout_p, cout_p), _pad_vec(blk["b2"], cout_p),
                       taps=K, dilation=d)
        blocks_meta.append(dict(cout_p=cout_p, has_down=has_down, conv1=m1, conv2=m2))
        cin_p = cout_p

    outputs = params["outputs"]
    out_p = _round_up(outputs, 8)
    mlin = add_entry(_pack_taps(params["lin_w"][:, :, None], out_p, cin_p),
                     _pad_vec(params["lin_b"], out_p), taps=1, dilation=1)

    c_w = _round_up(max(e.shape[1] for e in entries_w), 128)
    wblob = jnp.concatenate(
        [jnp.pad(e, ((0, 0), (0, c_w - e.shape[1]))) for e in entries_w], axis=0
    ).astype(jnp.bfloat16)                                        # (R_total, C_W) bf16
    bblob = jnp.concatenate(entries_b, axis=0)                    # (R_total, 1)  f32

    halo = sum(2 * (K - 1) * blk["dilation"] for blk in params["blocks"])
    mac = sum(m["rows"] * m["cols"] for m in entry_metas)
    cmax_p = max([c0_p, out_p] + [b["cout_p"] for b in blocks_meta])
    return dict(kernel_size=K, outputs=outputs, out_pad=out_p, c0_pad=c0_p, halo=halo,
                blocks=blocks_meta, linear=mlin, wblob=wblob, bblob=bblob,
                mac=int(mac), cmax_p=int(cmax_p))


# --------------------------------------------------------------------------------------
# Pure-JAX reference (mirrors the PyTorch forward) used only for correctness checking
# --------------------------------------------------------------------------------------
def _ref_causal_conv(x_bct, w_oik, b_o, dilation):
    B, Cin, T = x_bct.shape
    Cout, _, K = w_oik.shape
    pad = (K - 1) * dilation
    xp = jnp.pad(x_bct, ((0, 0), (0, 0), (pad, 0)))
    out = jnp.zeros((B, Cout, T), jnp.float32)
    for k in range(K):
        xs = xp[:, :, k * dilation: k * dilation + T]
        out = out + jnp.einsum("oi,bit->bot", w_oik[:, :, k], xs)
    return out + b_o[None, :, None]


def tcn_reference(params, x_nct):
    x = x_nct
    for blk in params["blocks"]:
        d = blk["dilation"]
        h = jnp.maximum(_ref_causal_conv(x, blk["w1"], blk["b1"], d), 0.0)
        h = jnp.maximum(_ref_causal_conv(h, blk["w2"], blk["b2"], d), 0.0)
        res = x if blk["wd"] is None else _ref_causal_conv(x, blk["wd"], blk["bd"], 1)
        x = jnp.maximum(h + res, 0.0)
    return jnp.einsum("oc,bct->bot", params["lin_w"], x) + params["lin_b"][None, :, None]


# --------------------------------------------------------------------------------------
if __name__ == "__main__":
    key = jax.random.PRNGKey(0)
    in_channels = 4
    dilations = [1, 2]
    channels = [8, 8]
    kernel_size = 3
    outputs = 3
    B, T = 2, 16

    kp, kx = jax.random.split(key)
    params = init_tcn_params(kp, in_channels, dilations, channels, kernel_size, outputs)
    kparams = prepare_kernel_params(params)
    x = jax.random.normal(kx, (B, in_channels, T), jnp.float32)

    y = jax.block_until_ready(tcn_forward(kparams, x))
    assert y.shape == (B, outputs, T), y.shape
    assert bool(jnp.all(jnp.isfinite(y)))

    y_ref = tcn_reference(params, x)
    err = float(jnp.max(jnp.abs(y - y_ref)))
    # Tolerance covers bf16 MXU operands (f32 reference).
    assert err < 5e-2, f"mismatch vs pure-JAX reference: max abs err {err}"
    print("KERNEL_OK")
</pallas_src>

<mosaic_0001>
module attributes {stable_mosaic.version = 11 : i64} {
  func.func @kernel(%arg0: i32, %arg1: i32, %arg2: memref<2x8x256xbf16, #tpu.memory_space<any>>, %arg3: memref<80x128xbf16, #tpu.memory_space<vmem>>, %arg4: memref<80x1xf32, #tpu.memory_space<vmem>>, %arg5: memref<1x8x128xf32, #tpu.memory_space<vmem>>, %arg6: memref<8x256xbf16, #tpu.memory_space<vmem>>, %arg7: memref<!tpu.dma_semaphore, #tpu.memory_space<semaphore_mem>>) attributes {dimension_semantics = [#tpu.dimension_semantics<parallel>, #tpu.dimension_semantics<parallel>], iteration_bounds = array<i64: 2, 1>, scalar_prefetch = 0 : i64, scratch_operands = 2 : i64, tpu.core_type = #tpu.core_type<tc>, window_params = [{}, {pipeline_mode = #tpu.pipeline_mode<synchronous>, transform_indices = @transform_1, window_bounds = array<i64: 80, 128>}, {pipeline_mode = #tpu.pipeline_mode<synchronous>, transform_indices = @transform_2, window_bounds = array<i64: 80, 1>}, {transform_indices = @transform_3, window_bounds = array<i64: 1, 8, 128>}]} {
    %c128_i32 = arith.constant 128 : i32
    %0 = arith.muli %arg1, %c128_i32 : i32
    %1 = tpu.assume_multiple %0, 128 : i32
    %c0_i32 = arith.constant 0 : i32
    %2 = tpu.memref_slice %arg2[%arg0, %c0_i32, %1] : memref<2x8x256xbf16, #tpu.memory_space<any>> -> memref<1x8x256xbf16, #tpu.memory_space<any>>
    %3 = tpu.memref_squeeze %2 : memref<1x8x256xbf16, #tpu.memory_space<any>> -> memref<8x256xbf16, #tpu.memory_space<any>>
    tpu.enqueue_dma source(%3 : memref<8x256xbf16, #tpu.memory_space<any>>) target(%arg6 : memref<8x256xbf16, #tpu.memory_space<vmem>>) target_semaphore(%arg7 : memref<!tpu.dma_semaphore, #tpu.memory_space<semaphore_mem>>)
    %c0_i32_0 = arith.constant 0 : i32
    %4 = tpu.memref_slice %arg2[%arg0, %c0_i32_0, %1] : memref<2x8x256xbf16, #tpu.memory_space<any>> -> memref<1x8x256xbf16, #tpu.memory_space<any>>
    %5 = tpu.memref_squeeze %4 : memref<1x8x256xbf16, #tpu.memory_space<any>> -> memref<8x256xbf16, #tpu.memory_space<any>>
    tpu.wait_dma2 semaphore(%arg7 : memref<!tpu.dma_semaphore, #tpu.memory_space<semaphore_mem>>) src(%5 : memref<8x256xbf16, #tpu.memory_space<any>>) dst(%arg6 : memref<8x256xbf16, #tpu.memory_space<vmem>>)
    %c0 = arith.constant 0 : index
    %c0_1 = arith.constant 0 : index
    %6 = vector.load %arg6[%c0, %c0_1] : memref<8x256xbf16, #tpu.memory_space<vmem>>, vector<8x256xbf16>
    %7 = arith.extf %6 : vector<8x256xbf16> to vector<8x256xf32>
    %c0_2 = arith.constant 0 : index
    %c0_3 = arith.constant 0 : index
    %8 = vector.load %arg3[%c0_2, %c0_3] : memref<80x128xbf16, #tpu.memory_space<vmem>>, vector<16x24xbf16>
    %c0_4 = arith.constant 0 : index
    %c0_5 = arith.constant 0 : index
    %9 = vector.load %arg4[%c0_4, %c0_5] : memref<80x1xf32, #tpu.memory_space<vmem>>, vector<16x1xf32>
    %cst = arith.constant 0.000000e+00 : f32
    %10 = vector.broadcast %cst : f32 to vector<8x2xf32>
    %11 = vector.extract_strided_slice %7 {offsets = [0, 0], sizes = [8, 254], strides = [1, 1]} : vector<8x256xf32> to vector<8x254xf32>
    %12 = tpu.concatenate %10, %11 in 1 : vector<8x2xf32>, vector<8x254xf32> -> vector<8x256xf32>
    %cst_6 = arith.constant 0.000000e+00 : f32
    %13 = vector.broadcast %cst_6 : f32 to vector<8x1xf32>
    %14 = vector.extract_strided_slice %7 {offsets = [0, 0], sizes = [8, 255], strides = [1, 1]} : vector<8x256xf32> to vector<8x255xf32>
    %15 = tpu.concatenate %13, %14 in 1 : vector<8x1xf32>, vector<8x255xf32> -> vector<8x256xf32>
    %16 = tpu.concatenate %12, %15, %7 in 0 : vector<8x256xf32>, vector<8x256xf32>, vector<8x256xf32> -> vector<24x256xf32>
    %17 = arith.truncf %16 : vector<24x256xf32> to vector<24x256xbf16>
    %cst_7 = arith.constant dense<0.000000e+00> : vector<16x256xf32>
    %18 = tpu.matmul %8, %17, %cst_7 {dimension_numbers = #tpu.dot_dimension_numbers<[1], [0], [0], [1], [0, 0, 1, 1], [], []>} : vector<16x24xbf16>, vector<24x256xbf16>, vector<16x256xf32> -> vector<16x256xf32>
    %19 = vector.broadcast %9 : vector<16x1xf32> to vector<16x256xf32>
    %20 = arith.addf %18, %19 : vector<16x256xf32>
    %21 = vector.extract_strided_slice %20 {offsets = [0, 0], sizes = [8, 256], strides = [1, 1]} : vector<16x256xf32> to vector<8x256xf32>
    %cst_8 = arith.constant 0.000000e+00 : f32
    %22 = vector.broadcast %cst_8 : f32 to vector<8x256xf32>
    %23 = arith.maximumf %21, %22 : vector<8x256xf32>
    %24 = vector.extract_strided_slice %20 {offsets = [8, 0], sizes = [8, 256], strides = [1, 1]} : vector<16x256xf32> to vector<8x256xf32>
    %c16 = arith.constant 16 : index
    %c0_9 = arith.constant 0 : index
    %25 = vector.load %arg3[%c16, %c0_9] : memref<80x128xbf16, #tpu.memory_space<vmem>>, vector<16x24xbf16>
    %c16_10 = arith.constant 16 : index
    %c0_11 = arith.constant 0 : index
    %26 = vector.load %arg4[%c16_10, %c0_11] : memref<80x1xf32, #tpu.memory_space<vmem>>, vector<16x1xf32>
    %cst_12 = arith.constant 0.000000e+00 : f32
    %27 = vector.broadcast %cst_12 : f32 to vector<8x2xf32>
    %28 = vector.extract_strided_slice %23 {offsets = [0, 0], sizes = [8, 254], strides = [1, 1]} : vector<8x256xf32> to vector<8x254xf32>
    %29 = tpu.concatenate %27, %28 in 1 : vector<8x2xf32>, vector<8x254xf32> -> vector<8x256xf32>
    %cst_13 = arith.constant 0.000000e+00 : f32
    %30 = vector.broadcast %cst_13 : f32 to vector<8x1xf32>
    %31 = vector.extract_strided_slice %23 {offsets = [0, 0], sizes = [8, 255], strides = [1, 1]} : vector<8x256xf32> to vector<8x255xf32>
    %32 = tpu.concatenate %30, %31 in 1 : vector<8x1xf32>, vector<8x255xf32> -> vector<8x256xf32>
    %33 = tpu.concatenate %29, %32, %23 in 0 : vector<8x256xf32>, vector<8x256xf32>, vector<8x256xf32> -> vector<24x256xf32>
    %34 = arith.truncf %33 : vector<24x256xf32> to vector<24x256xbf16>
    %cst_14 = arith.constant dense<0.000000e+00> : vector<16x256xf32>
    %35 = tpu.matmul %25, %34, %cst_14 {dimension_numbers = #tpu.dot_dimension_numbers<[1], [0], [0], [1], [0, 0, 1, 1], [], []>} : vector<16x24xbf16>, vector<24x256xbf16>, vector<16x256xf32> -> vector<16x256xf32>
    %36 = vector.broadcast %26 : vector<16x1xf32> to vector<16x256xf32>
    %37 = arith.addf %35, %36 : vector<16x256xf32>
    %38 = vector.extract_strided_slice %37 {offsets = [0, 0], sizes = [8, 256], strides = [1, 1]} : vector<16x256xf32> to vector<8x256xf32>
    %cst_15 = arith.constant 0.000000e+00 : f32
    %39 = vector.broadcast %cst_15 : f32 to vector<8x256xf32>
    %40 = arith.maximumf %38, %39 : vector<8x256xf32>
    %41 = arith.addf %40, %24 : vector<8x256xf32>
    %cst_16 = arith.constant 0.000000e+00 : f32
    %42 = vector.broadcast %cst_16 : f32 to vector<8x256xf32>
    %43 = arith.maximumf %41, %42 : vector<8x256xf32>
    %c32 = arith.constant 32 : index
    %c0_17 = arith.constant 0 : index
    %44 = vector.load %arg3[%c32, %c0_17] : memref<80x128xbf16, #tpu.memory_space<vmem>>, vector<16x24xbf16>
    %c32_18 = arith.constant 32 : index
    %c0_19 = arith.constant 0 : index
    %45 = vector.load %arg4[%c32_18, %c0_19] : memref<80x1xf32, #tpu.memory_space<vmem>>, vector<16x1xf32>
    %cst_20 = arith.constant 0.000000e+00 : f32
    %46 = vector.broadcast %cst_20 : f32 to vector<8x4xf32>
    %47 = vector.extract_strided_slice %43 {offsets = [0, 0], sizes = [8, 252], strides = [1, 1]} : vector<8x256xf32> to vector<8x252xf32>
    %48 = tpu.concatenate %46, %47 in 1 : vector<8x4xf32>, vector<8x252xf32> -> vector<8x256xf32>
    %cst_21 = arith.constant 0.000000e+00 : f32
    %49 = vector.broadcast %cst_21 : f32 to vector<8x2xf32>
    %50 = vector.extract_strided_slice %43 {offsets = [0, 0], sizes = [8, 254], strides = [1, 1]} : vector<8x256xf32> to vector<8x254xf32>
    %51 = tpu.concatenate %49, %50 in 1 : vector<8x2xf32>, vector<8x254xf32> -> vector<8x256xf32>
    %52 = tpu.concatenate %48, %51, %43 in 0 : vector<8x256xf32>, vector<8x256xf32>, vector<8x256xf32> -> vector<24x256xf32>
    %53 = arith.truncf %52 : vector<24x256xf32> to vector<24x256xbf16>
    %cst_22 = arith.constant dense<0.000000e+00> : vector<16x256xf32>
    %54 = tpu.matmul %44, %53, %cst_22 {dimension_numbers = #tpu.dot_dimension_numbers<[1], [0], [0], [1], [0, 0, 1, 1], [], []>} : vector<16x24xbf16>, vector<24x256xbf16>, vector<16x256xf32> -> vector<16x256xf32>
    %55 = vector.broadcast %45 : vector<16x1xf32> to vector<16x256xf32>
    %56 = arith.addf %54, %55 : vector<16x256xf32>
    %57 = vector.extract_strided_slice %56 {offsets = [0, 0], sizes = [8, 256], strides = [1, 1]} : vector<16x256xf32> to vector<8x256xf32>
    %cst_23 = arith.constant 0.000000e+00 : f32
    %58 = vector.broadcast %cst_23 : f32 to vector<8x256xf32>
    %59 = arith.maximumf %57, %58 : vector<8x256xf32>
    %c48 = arith.constant 48 : index
    %c0_24 = arith.constant 0 : index
    %60 = vector.load %arg3[%c48, %c0_24] : memref<80x128xbf16, #tpu.memory_space<vmem>>, vector<16x24xbf16>
    %c48_25 = arith.constant 48 : index
    %c0_26 = arith.constant 0 : index
    %61 = vector.load %arg4[%c48_25, %c0_26] : memref<80x1xf32, #tpu.memory_space<vmem>>, vector<16x1xf32>
    %cst_27 = arith.constant 0.000000e+00 : f32
    %62 = vector.broadcast %cst_27 : f32 to vector<8x4xf32>
    %63 = vector.extract_strided_slice %59 {offsets = [0, 0], sizes = [8, 252], strides = [1, 1]} : vector<8x256xf32> to vector<8x252xf32>
    %64 = tpu.concatenate %62, %63 in 1 : vector<8x4xf32>, vector<8x252xf32> -> vector<8x256xf32>
    %cst_28 = arith.constant 0.000000e+00 : f32
    %65 = vector.broadcast %cst_28 : f32 to vector<8x2xf32>
    %66 = vector.extract_strided_slice %59 {offsets = [0, 0], sizes = [8, 254], strides = [1, 1]} : vector<8x256xf32> to vector<8x254xf32>
    %67 = tpu.concatenate %65, %66 in 1 : vector<8x2xf32>, vector<8x254xf32> -> vector<8x256xf32>
    %68 = tpu.concatenate %64, %67, %59 in 0 : vector<8x256xf32>, vector<8x256xf32>, vector<8x256xf32> -> vector<24x256xf32>
    %69 = arith.truncf %68 : vector<24x256xf32> to vector<24x256xbf16>
    %cst_29 = arith.constant dense<0.000000e+00> : vector<16x256xf32>
    %70 = tpu.matmul %60, %69, %cst_29 {dimension_numbers = #tpu.dot_dimension_numbers<[1], [0], [0], [1], [0, 0, 1, 1], [], []>} : vector<16x24xbf16>, vector<24x256xbf16>, vector<16x256xf32> -> vector<16x256xf32>
    %71 = vector.broadcast %61 : vector<16x1xf32> to vector<16x256xf32>
    %72 = arith.addf %70, %71 : vector<16x256xf32>
    %73 = vector.extract_strided_slice %72 {offsets = [0, 0], sizes = [8, 256], strides = [1, 1]} : vector<16x256xf32> to vector<8x256xf32>
    %cst_30 = arith.constant 0.000000e+00 : f32
    %74 = vector.broadcast %cst_30 : f32 to vector<8x256xf32>
    %75 = arith.maximumf %73, %74 : vector<8x256xf32>
    %76 = arith.addf %75, %43 : vector<8x256xf32>
    %cst_31 = arith.constant 0.000000e+00 : f32
    %77 = vector.broadcast %cst_31 : f32 to vector<8x256xf32>
    %78 = arith.maximumf %76, %77 : vector<8x256xf32>
    %c64 = arith.constant 64 : index
    %c0_32 = arith.constant 0 : index
    %79 = vector.load %arg3[%c64, %c0_32] : memref<80x128xbf16, #tpu.memory_space<vmem>>, vector<16x8xbf16>
    %c64_33 = arith.constant 64 : index
    %c0_34 = arith.constant 0 : index
    %80 = vector.load %arg4[%c64_33, %c0_34] : memref<80x1xf32, #tpu.memory_space<vmem>>, vector<16x1xf32>
    %81 = arith.truncf %78 : vector<8x256xf32> to vector<8x256xbf16>
    %cst_35 = arith.constant dense<0.000000e+00> : vector<16x256xf32>
    %82 = tpu.matmul %79, %81, %cst_35 {dimension_numbers = #tpu.dot_dimension_numbers<[1], [0], [0], [1], [0, 0, 1, 1], [], []>} : vector<16x8xbf16>, vector<8x256xbf16>, vector<16x256xf32> -> vector<16x256xf32>
    %83 = vector.broadcast %80 : vector<16x1xf32> to vector<16x256xf32>
    %84 = arith.addf %82, %83 : vector<16x256xf32>
    %85 = vector.extract_strided_slice %84 {offsets = [0, 128], sizes = [8, 128], strides = [1, 1]} : vector<16x256xf32> to vector<8x128xf32>
    %c0_36 = arith.constant 0 : index
    %c0_37 = arith.constant 0 : index
    %c0_38 = arith.constant 0 : index
    %86 = vector.load %arg5[%c0_36, %c0_37, %c0_38] : memref<1x8x128xf32, #tpu.memory_space<vmem>>, vector<1x8x128xf32>
    %87 = vector.shape_cast %86 : vector<1x8x128xf32> to vector<8x128xf32>
    %88 = vector.shape_cast %85 : vector<8x128xf32> to vector<1x8x128xf32>
    tpu.vector_store %arg5[%c0_36, %c0_37, %c0_38], %88 {strides = array<i32>} : memref<1x8x128xf32, #tpu.memory_space<vmem>>, vector<1x8x128xf32>,
    return
  }
  func.func @transform_1(%arg0: i32, %arg1: i32) -> (i32, i32) {
    %c0_i32 = arith.constant 0 : i32
    %c0_i32_0 = arith.constant 0 : i32
    %c0_i32_1 = arith.constant 0 : i32
    return %c0_i32, %c0_i32_0 : i32, i32
  }
  func.func @transform_2(%arg0: i32, %arg1: i32) -> (i32, i32) {
    %c0_i32 = arith.constant 0 : i32
    %c0_i32_0 = arith.constant 0 : i32
    %c0_i32_1 = arith.constant 0 : i32
    return %c0_i32, %c0_i32_0 : i32, i32
  }
  func.func @transform_3(%arg0: i32, %arg1: i32) -> (i32, i32, i32) {
    %c0_i32 = arith.constant 0 : i32
    %c0_i32_0 = arith.constant 0 : i32
    return %arg0, %c0_i32, %arg1 : i32, i32, i32
  }
}

</mosaic_0001>

<bundles_post_ra>
// kernel: tpu_custom_call.1
= control target key start
LH: loop header
LB: loop body
LE: loop exit
PB: predicated region body
PF: predicated region fallthrough
CT: control target
= control target key end

     0   :  { %8 = vsyncpa [#allocation5], 0  ;;  %s1248_s0 = inlined_call_operand.vmem [shape: bf16[2,8,256], index: 0, kind: input, shape index: {}]   ;;  %s1249_s1 = inlined_call_operand.vmem [shape: bf16[80,128], index: 1, kind: input, shape index: {}]   ;;  %s1250_s2 = inlined_call_operand.vmem [shape: f32[80,1], index: 2, kind: input, shape index: {}]   ;;  %s1251_s3 = inlined_call_operand.hbm [shape: f32[2,8,128], index: 3, kind: output, shape index: {}]  }
   0x1   :  { %10 = vsyncpa [#allocation5 + $0x1], 0  ;;  %s1001_s12 = smov 0   ;;  %s1003_s13 = smov 0  }
   0x2   :  { %s1005_s14 = smov 0   ;;  %s1007_s15 = smov 0  }
   0x3   :  { %s1009_s16 = smov 0   ;;  %s1011_s17 = smov 0  }
   0x4 LB: > { %s738_s18 = sadd.s32 4294967295, %s974_s17   ;;  %s739_s19 = sadd.s32 4294967294, %s974_s17   ;;  %s974_s17 = sphi %s1011_s17, %s16_s17   ;;  %s970_s16 = sphi %s1009_s16, %s1264_s16   ;;  %s966_s15 = sphi %s1007_s15, %s1263_s15   ;;  %s962_s14 = sphi %s1005_s14, %s1262_s14   ;;  %s958_s13 = sphi %s1003_s13, %s1261_s13   ;;  %s954_s12 = sphi %s1001_s12, %s1260_s12  }
   0x5   : > { %s28_s20 = sadd.s32 1, %s970_s16  ;;  %s79_s21 = sadd.s32 1, %s962_s14 }
   0x6   : > { %p30_p0 = scmp.ge.s32.totalorder %s28_s20, 2  ;;  %p89_p1 = scmp.ne.s32.totalorder %s962_s14, %s958_s13 }
   0x7   : > { %p90_p2 = scmp.eq.s32.totalorder %s738_s18, 1  ;;  %p95_p3 = scmp.ne.s32.totalorder %s958_s13, %s954_s12 }
   0x8   : > { %s1266_s20 = smov (%p30_p0, %s28_s20), 0  ;;  %p96_p5 = scmp.eq.s32.totalorder %s739_s19, 1 }
   0x9   : > { %p1041_p4 = por %p90_p2, %p89_p1  ;;  %s74_s23 = ssub.s32 %s970_s16, %s1266_s20 }
   0xa   : > { %p741_p6 = scmp.ge.s32.totalorder %s974_s17, 1  ;;  %p77_p7 = scmp.eq.s32.totalorder %s74_s23, 0 }
   0xb   : > { %p1048_p8 = por %p96_p5, %p95_p3  ;;  %p120_p9 = scmp.lt.s32.totalorder %s974_s17, 3 }
   0xc   : > { %s1054_s25 = scalar_select %p77_p7, %s962_s14, %s79_s21  }
   0xd   : > { %p121_p10 = pnand %p741_p6, %p120_p9 }
   0xe   : > { %s134_s26 = sand.u32 (!%p121_p10), 1, %s958_s13   ;;  %s787_s27 = sshll.u32 (!%p121_p10), %s966_s15, 3 }
   0xf   : > { %124 = sbr.rel (%p121_p10) target bundleno = 1663 (0x67f), region = 28  ;;  %s1060_s28 = sshll.u32 (!%p121_p10), %s134_s26, 3 }
  0x10   : > { %s144_s4 = scalar_lea.vmem (!%p121_p10), %s1248_s0, %s787_s27  ;;  %s136_s5 = scalar_lea.vmem (!%p121_p10), [#allocation4], %s1060_s28 }
  0x11   : > { %v177_v0 = vld [vmem:[%s144_s4] sm:$0xff] (!%p121_p10) }
  0x16   : > { %186 = vsyncadd [#allocation3], 128  ;;  %v192_v1 = vunpack.c.l.bf16 %v177_v0  ;;  %v193_v2 = vunpack.c.h.bf16 %v177_v0 }
  0x17   : > { %946 = dma.done.wait [#allocation3], 128 }
  0x18   : > { %947 = vsyncadd [#allocation3], 4294967168  ;;  %v847_v3 = vpack.i.bf16 %v193_v2, %v192_v1  ;;  %s976_s6 = smov 2   ;;  %v977_v4 = vmov 0   ;;  %s978_s7 = smov 1   ;;  %v196_v5 = vld [vmem:[%s1250_s2] sm:$0xff]  ;;  %v746_v17 = vcombine.high %v177_v0, %v177_v0  ;;  %v745_v18 = vcombine.low %v177_v0, %v177_v0 }
  0x19   : > { %280 = vmatprep.mubr.bf16.mxu0 %v977_v4  ;;  %857 = vset.pattern.permute.xlu1 %v977_v4  ;;  %vm213_vm0 = vcmask 7168   ;;  %vm204_vm1 = vcmask 15360   ;;  %vm241_vm5 = vcmask 1043456   ;;  %v889_v21 = vld [vmem:[%s1249_s1] sm:$0xff]   ;;  %vm237_vm6 = vcmask 195584   ;;  %v197_v32 = vld [vmem:[%s1250_s2 + $0x8] sm:$0xff] }
  0x1a   : > { %848 = vrot.lane.b32.xlu0 %v847_v3, %s976_s6  ;;  %374 = vmatprep.mubr.bf16.mxu1 %v977_v4  ;;  %vm1076_vm2 = vmneg %vm213_vm0  ;;  %v243_v20 = vsel %vm241_vm5, %v745_v18, 0  ;;  %v295_v33 = vld [vmem:[%s1250_s2 + $0x10] sm:$0xff]  ;;  %v391_v34 = vld [vmem:[%s1250_s2 + $0x20] sm:$0xff]  ;;  %vm399_vm7 = vcmask 31744   ;;  %vm598_vm10 = vcmask 64512   ;;  %s783_s29 = sshll.u32 %s966_s15, 7 }
  0x1b   : > { %868 = vset.pattern.permute.xlu0 %v977_v4  ;;  %224 = vperm.xlu1 %857, %v196_v5   ;;  %vm1081_vm3 = vmneg %vm204_vm1  ;;  %v890_v48 = vld [vmem:[%s1249_s1 + $0x8] sm:$0xff]   ;;  %v891_v18 = vld [vmem:[%s1249_s1 + $0x10] sm:$0xff]   ;;  %s664_s30 = sshll.u32 %s136_s5, 4  ;;  %s1197_s8 = scalar_lea.hbm %s1251_s3, %s783_s29  ;;  %s1199_s30 = int_to_ptr.vmem [resolvable:$true] %s664_s30 }
  0x1c   : > { %vm750_vm4 = vmpackc.low %vm1076_vm2, %vm1081_vm3  ;;  %s650_s15 = scalar_lea.sflag [#allocation5], %s134_s26  ;;  %s894_s9 = scalar_lea.vmem %s1199_s30, 128 }
  0x1d   : > { %vm1137_vm8 = vmneg %vm399_vm7  ;;  %p895_p11 = scmp.ne.s32.totalorder %s1199_s30, %s894_s9  ;;  %s980_s10 = smov [#allocation4]  }
  0x1e   : > { %853 = vrot.lane.b32.xlu0 %v847_v3, %s978_s7  ;;  %vm766_vm9 = vmpackc.low %vm1081_vm3, %vm1137_vm8  ;;  %s898_s11 = sshll.u32 %s980_s10, 4  ;;  %s899_s11 = int_to_ptr.vmem [resolvable:$false] %s898_s11 }
  0x1f   : > { %p896_p12 = pnand %p895_p11, %p1041_p4  ;;  %s900_s18 = scalar_lea.vmem %s899_s11, 256 }
  0x20   : > { %p901_p0 = scmp.lt.s32.totalorder %s1199_s30, %s899_s11  ;;  %p902_p1 = scmp.lt.s32.totalorder %s900_s18, %s894_s9 }
  0x21   : > { %p897_p13 = pneg %p896_p12 }
  0x22   : > { %p903_p2 = por %p902_p1, %p901_p0 }
  0x24   : > { %p904_p3 = pnand %p903_p2, %p897_p13 }
  0x8c   : > { %v849_v6 = vpop.permute.xlu0 %848 }
  0x8d   : > { %v851_v7 = vunpack.i.h.bf16 %v849_v6  ;;  %v850_v8 = vunpack.i.l.bf16 %v849_v6 }
  0x8f   : > { %v205_v14 = vsel %vm204_vm1, %v850_v8, %v851_v7 }
  0x90   : > { %v854_v9 = vpop.permute.xlu0 %853 }
  0x91   : > { %v856_v11 = vunpack.i.h.bf16 %v854_v9  ;;  %v855_v12 = vunpack.i.l.bf16 %v854_v9 }
  0x93   : > { %v214_v15 = vsel %vm213_vm0, %v855_v12, %v856_v11  ;;  %v751_v19 = vpack.c.bf16 %v855_v12, %v850_v8 }
  0x94   : > { %v219_v16 = vpack.c.bf16 %v214_v15, %v205_v14 }
  0x96   : > { %248 = vmatprep.subr.bf16.mxu0 %v219_v16 }
  0x97   : > { %752 = vmatpush1.bf16.msk.msra.mxu0 %vm750_vm4, %v751_v19 }
  0x98   : > { %753 = vmatprep.subr.msk.bf16.mxu0 %vm241_vm5, %v746_v17 }
  0x9a   : > { %v225_v22 = vpop.permute.xlu1 %224 }
  0x9b   : > { %251 = vmatpush1.bf16.msra.mxu0 %v243_v20 }
  0x9e   : > { %754 = vmatmul.mubr.msk.bf16.vlgmr.msra.gmra.mrb[0].mxu0 %vm237_vm6, %v889_v21 }
  0x9f   : > { %471 = vmatprep.mubr.bf16.mxu0 %v977_v4 }
 0x171   : > { %v282_v23 = vpop.f32.mrb[0].mxu0 }
 0x172   : > { %v283_v24 = vadd.f32 %v282_v23, %v225_v22  ;;  %v284_v25 = vpop.f32.mrb[1].mxu0 }
 0x173   : > { %v285_v26 = vadd.f32 %v284_v25, %v225_v22  ;;  %v286_v27 = vpop.f32.mrb[2].mxu0 }
 0x174   : > { %v291_v28 = vmax.f32 %v283_v24, 0.0  ;;  %v288_v29 = vpop.f32.mrb[3].mxu0 }
 0x175   : > { %v292_v30 = vmax.f32 %v285_v26, 0.0 }
 0x176   : > { %v317_v46 = vpack.c.bf16 %v291_v28, %v291_v28 }
 0x177   : > { %v863_v31 = vpack.i.bf16 %v292_v30, %v291_v28  ;;  %v318_v45 = vpack.c.bf16 %v292_v30, %v292_v30 }
 0x178   : > { %v337_v47 = vsel %vm241_vm5, %v317_v46, 0 }
 0x179   : > { %864 = vrot.lane.b32.xlu0 %v863_v31, %s978_s7  ;;  %859 = vrot.lane.b32.xlu1 %v863_v31, %s976_s6  ;;  %s979_s7 = smov 4  }
 0x17d   : > { %229 = vperm.xlu0 %868, %v197_v32   ;;  %321 = vperm.xlu1 %857, %v295_v33  }
 0x181   : > { %418 = vperm.xlu0 %868, %v391_v34  }
 0x1eb   : > { %v865_v35 = vpop.permute.xlu0 %864  ;;  %v860_v36 = vpop.permute.xlu1 %859 }
 0x1ec   : > { %v867_v37 = vunpack.i.h.bf16 %v865_v35  ;;  %v866_v38 = vunpack.i.l.bf16 %v865_v35  ;;  %v862_v39 = vunpack.i.h.bf16 %v860_v36  ;;  %v861_v40 = vunpack.i.l.bf16 %v860_v36 }
 0x1ee   : > { %v303_v41 = vsel %vm204_vm1, %v861_v40, %v862_v39  ;;  %v311_v42 = vsel %vm213_vm0, %v866_v38, %v867_v37  ;;  %v759_v44 = vpack.c.bf16 %v866_v38, %v861_v40 }
 0x1ef   : > { %v316_v43 = vpack.c.bf16 %v311_v42, %v303_v41 }
 0x1f1   : > { %342 = vmatprep.subr.bf16.mxu1 %v316_v43  ;;  %v892_v43 = vld [vmem:[%s1249_s1 + $0x18] sm:$0xff]  }
 0x1f2   : > { %760 = vmatpush1.bf16.msk.msra.mxu1 %vm750_vm4, %v759_v44 }
 0x1f3   : > { %761 = vmatprep.subr.msk.bf16.mxu1 %vm241_vm5, %v318_v45 }
 0x1f6   : > { %345 = vmatpush1.bf16.msra.mxu1 %v337_v47 }
 0x1f9   : > { %762 = vmatmul.mubr.msk.bf16.vlgmr.msra.gmra.mrb[0].mxu1 %vm237_vm6, %v890_v48 }
 0x1fa   : > { %563 = vmatprep.mubr.bf16.mxu1 %v977_v4 }
 0x1fc   : > { %v230_v49 = vpop.permute.xlu0 %229  ;;  %v322_v50 = vpop.permute.xlu1 %321 }
 0x1fd   : > { %v287_v56 = vadd.f32 %v286_v27, %v230_v49  ;;  %v289_v59 = vadd.f32 %v288_v29, %v230_v49  ;;  %v580_v29 = vld [vmem:[%s1250_s2 + $0x40] sm:$0xff] }
 0x200   : > { %v419_v19 = vpop.permute.xlu0 %418 }
 0x2cc   : > { %v376_v51 = vpop.f32.mrb[0].mxu1 }
 0x2cd   : > { %v377_v52 = vadd.f32 %v376_v51, %v322_v50  ;;  %v378_v53 = vpop.f32.mrb[1].mxu1 }
 0x2ce   : > { %v379_v54 = vadd.f32 %v378_v53, %v322_v50  ;;  %v380_v55 = vpop.f32.mrb[2].mxu1 }
 0x2cf   : > { %v383_v57 = vmax.f32 %v377_v52, 0.0  ;;  %v381_v58 = vpop.f32.mrb[3].mxu1 }
 0x2d0   : > { %v384_v60 = vmax.f32 %v379_v54, 0.0 }
 0x2d1   : > { %v385_v61 = vadd.f32 %v383_v57, %v287_v56 }
 0x2d2   : > { %v386_v62 = vadd.f32 %v384_v60, %v289_v59  ;;  %v893_v59 = vld [vmem:[%s1249_s1 + $0x20] sm:$0xff]  }
 0x2d3   : > { %v1128_v63 = vmax.f32 %v385_v61, 0.0 }
 0x2d4   : > { %v1130_v0 = vmax.f32 %v386_v62, 0.0 }
 0x2d5   : > { %v414_v16 = vpack.c.bf16 %v1128_v63, %v1128_v63 }
 0x2d6   : > { %v869_v1 = vpack.i.bf16 %v1130_v0, %v1128_v63  ;;  %v415_v15 = vpack.c.bf16 %v1130_v0, %v1130_v0 }
 0x2d7   : > { %v434_v17 = vsel %vm241_vm5, %v414_v16, 0 }
 0x2d8   : > { %870 = vrot.lane.b32.xlu1 %v869_v1, %s979_s7 }
 0x2dc   : > { %875 = vrot.lane.b32.xlu1 %v869_v1, %s976_s6 }
 0x34a   : > { %v871_v2 = vpop.permute.xlu1 %870 }
 0x34b   : > { %v873_v3 = vunpack.i.h.bf16 %v871_v2  ;;  %v872_v5 = vunpack.i.l.bf16 %v871_v2 }
 0x34d   : > { %v400_v10 = vsel %vm399_vm7, %v872_v5, %v873_v3 }
 0x34e   : > { %v876_v6 = vpop.permute.xlu1 %875 }
 0x34f   : > { %v878_v8 = vunpack.i.h.bf16 %v876_v6  ;;  %v877_v9 = vunpack.i.l.bf16 %v876_v6 }
 0x351   : > { %v408_v11 = vsel %vm204_vm1, %v877_v9, %v878_v8  ;;  %v767_v14 = vpack.c.bf16 %v877_v9, %v872_v5 }
 0x352   : > { %v413_v12 = vpack.c.bf16 %v408_v11, %v400_v10 }
 0x354   : > { %439 = vmatprep.subr.bf16.mxu0 %v413_v12 }
 0x355   : > { %768 = vmatpush1.bf16.msk.msra.mxu0 %vm766_vm9, %v767_v14 }
 0x356   : > { %769 = vmatprep.subr.msk.bf16.mxu0 %vm241_vm5, %v415_v15 }
 0x359   : > { %442 = vmatpush1.bf16.msra.mxu0 %v434_v17 }
 0x35c   : > { %770 = vmatmul.mubr.msk.bf16.vlgmr.msra.gmra.mrb[4].mxu0 %vm237_vm6, %v891_v18 }
 0x35d   : > { %640 = vmatprep.mubr.bf16.mxu0 %v977_v4  ;;  %v484_v4 = vld [vmem:[%s1250_s2 + $0x30] sm:$0xff] }
 0x42f   : > { %v473_v20 = vpop.f32.mrb[4].mxu0 }
 0x430   : > { %v474_v21 = vadd.f32 %v473_v20, %v419_v19  ;;  %v475_v22 = vpop.f32.mrb[5].mxu0 }
 0x431   : > { %v476_v23 = vadd.f32 %v475_v22, %v419_v19  ;;  %v477_v24 = vpop.f32.mrb[6].mxu0 }
 0x432   : > { %v480_v25 = vmax.f32 %v474_v21, 0.0  ;;  %v478_v26 = vpop.f32.mrb[7].mxu0 }
 0x433   : > { %v481_v27 = vmax.f32 %v476_v23, 0.0 }
 0x434   : > { %v506_v41 = vpack.c.bf16 %v480_v25, %v480_v25 }
 0x435   : > { %v884_v28 = vpack.i.bf16 %v481_v27, %v480_v25  ;;  %v507_v40 = vpack.c.bf16 %v481_v27, %v481_v27 }
 0x436   : > { %v526_v42 = vsel %vm241_vm5, %v506_v41, 0 }
 0x437   : > { %885 = vrot.lane.b32.xlu0 %v884_v28, %s976_s6  ;;  %880 = vrot.lane.b32.xlu1 %v884_v28, %s979_s7 }
 0x43b   : > { %586 = vperm.xlu0 %868, %v580_v29   ;;  %510 = vperm.xlu1 %857, %v484_v4  }
 0x4a9   : > { %v886_v30 = vpop.permute.xlu0 %885  ;;  %v881_v31 = vpop.permute.xlu1 %880 }
 0x4aa   : > { %v888_v32 = vunpack.i.h.bf16 %v886_v30  ;;  %v887_v33 = vunpack.i.l.bf16 %v886_v30  ;;  %v883_v34 = vunpack.i.h.bf16 %v881_v31  ;;  %v882_v35 = vunpack.i.l.bf16 %v881_v31 }
 0x4ac   : > { %v492_v36 = vsel %vm399_vm7, %v882_v35, %v883_v34  ;;  %v500_v37 = vsel %vm204_vm1, %v887_v33, %v888_v32  ;;  %v775_v39 = vpack.c.bf16 %v887_v33, %v882_v35 }
 0x4ad   : > { %v505_v38 = vpack.c.bf16 %v500_v37, %v492_v36 }
 0x4af   : > { %531 = vmatprep.subr.bf16.mxu1 %v505_v38 }
 0x4b0   : > { %776 = vmatpush1.bf16.msk.msra.mxu1 %vm766_vm9, %v775_v39 }
 0x4b1   : > { %777 = vmatprep.subr.msk.bf16.mxu1 %vm241_vm5, %v507_v40 }
 0x4b4   : > { %534 = vmatpush1.bf16.msra.mxu1 %v526_v42 }
 0x4b7   : > { %778 = vmatmul.mubr.msk.bf16.vlgmr.msra.gmra.mrb[4].mxu1 %vm237_vm6, %v892_v43 }
 0x4ba   : > { %v511_v44 = vpop.permute.xlu1 %510  ;;  %v587_v61 = vpop.permute.xlu0 %586 }
 0x58a   : > { %v565_v45 = vpop.f32.mrb[4].mxu1 }
 0x58b   : > { %v566_v46 = vadd.f32 %v565_v45, %v511_v44  ;;  %v567_v47 = vpop.f32.mrb[5].mxu1 }
 0x58c   : > { %v568_v13 = vadd.f32 %v567_v47, %v511_v44  ;;  %v569_v48 = vpop.f32.mrb[6].mxu1 }
 0x58d   : > { %v572_v49 = vmax.f32 %v566_v46, 0.0  ;;  %v570_v50 = vpop.f32.mrb[7].mxu1 }
 0x58e   : > { %v573_v51 = vmax.f32 %v568_v13, 0.0 }
 0x58f   : > { %v574_v52 = vadd.f32 %v572_v49, %v1128_v63 }
 0x590   : > { %v575_v53 = vadd.f32 %v573_v51, %v1130_v0 }
 0x591   : > { %v576_v54 = vmax.f32 %v574_v52, 0.0 }
 0x592   : > { %v577_v55 = vmax.f32 %v575_v53, 0.0 }
 0x593   : > { %v582_v56 = vpack.c.bf16 %v576_v54, %v576_v54 }
 0x594   : > { %v583_v57 = vpack.c.bf16 %v577_v55, %v577_v55 }
 0x595   : > { %v603_v58 = vsel %vm241_vm5, %v582_v56, 0 }
 0x596   : > { %780 = vmatprep.subr.msk.bf16.mxu0 %vm241_vm5, %v583_v57 }
 0x597   : > { %609 = vmatpush1.bf16.msra.mxu0 %v603_v58 }
 0x59a   : > { %781 = vmatmul.mubr.msk.bf16.vlgmr.msra.gmra.mrb[8].mxu0 %vm598_vm10, %v893_v59 }
 0x66d   : > { %v642_v60 = vpop.f32.mrb[8].mxu0 }
 0x66e   : > { %v643_v62 = vpop.f32.mrb[9].mxu0 }
 0x66f   : > { %v644_v63 = vadd.f32 %v643_v62, %v587_v61  ;;  %v645_v0 = vpop.f32.mrb[10].mxu0 }
 0x670   : > { %v646_v1 = vpop.f32.mrb[11].mxu0 }
 0x671   : > { %648 = vst [vmem:[%s136_s5] sm:$0xff] %v644_v63 }
 0x672   : > { %907 = shalt.err (!%p904_p3)
}
 0x673   : > { %s908_s26 = scalar_lea.hbm %s1197_s8, 128  ;;  %s912_s19 = scalar_lea.hbm %s1251_s3, 256 }
 0x674   : > { %p909_p5 = scmp.ne.s32.totalorder %s1197_s8, %s908_s26  ;;  %p913_p9 = scmp.lt.u32.totalorder %s1197_s8, %s1251_s3 }
 0x675   : > { %p914_p10 = scmp.lt.u32.totalorder %s912_s19, %s908_s26  ;;  %p916_p12 = scmp.lt.u32.totalorder %s908_s26, %s1197_s8 }
 0x676   : > { %p910_p6 = pnand %p909_p5, %p1041_p4 }
 0x677   : > { %p915_p11 = por %p914_p10, %p913_p9 }
 0x678   : > { %p911_p7 = pneg %p910_p6 }
 0x679   : > { %p917_p13 = por %p916_p12, %p915_p11 }
 0x67b   : > { %p918_p0 = pnand %p917_p13, %p911_p7 }
 0x67d   : > { %921 = shalt.err (!%p918_p0)
}
 0x67e   : > { %788 = dma.vmem_to_hbm [thread:$0]  (%p1041_p4), %s1199_s30, 128, %s1197_s8, %s650_s15  }
 0x67f PF: > { %p794_p1 = scmp.ge.s32.totalorder %s974_s17, 2  ;;  %s676_s23 = sand.u32 1, %s954_s12  }
 0x680   : > { %s677_s27 = scalar_lea.sflag [#allocation5], %s676_s23 }
 0x681   : > { %p791_p2 = pnand %p794_p1, %p1048_p8 }
 0x683   : > { %949 = dma.done.wait (!%p791_p2), %s677_s27, 128  }
 0x684   : > { %951 = vsyncadd (!%p791_p2), %s677_s27, 4294967168  ;;  %s16_s17 = sadd.s32 1, %s974_s17   ;;  %s1260_s12 = smov %s958_s13 }
 0x685   : > { %p13_p3 = scmp.ge.s32.totalorder %s16_s17, 4   ;;  %s1261_s13 = smov %s962_s14 }
 0x686   : > { %s1262_s14 = smov %s1054_s25  ;;  %s1263_s15 = smov %s970_s16 }
 0x687   : > { %s1264_s16 = smov %s1266_s20  ;;  %15 = sbr.rel (!%p13_p3) target bundleno = 4 (0x4), region = 103 }
 0x68e   :  { %682 = vsyncpa [#allocation5], 1 }
 0x68f   :  { %684 = vsyncpa [#allocation5 + $0x1], 1 }
 0x690   :  { %685 = vsyncmov [#allocation3] }
 0x693   :  { %s686_s22 = vpop.sfrf %685 }
 0x694   :  { %p786_p4 = scmp.ne.s32.totalorder %s686_s22, 0 }
 0x696   :  { %690 = shalt.err (%p786_p4)  }

</bundles_post_ra>
